<compile_context>
chip_gen: v6e
topology: v6e:2x2x1
jax: 0.10.0
libtpu: 0.0.40
codegen_flags: <defaults>
</compile_context>

<pallas_src>
import functools
import math

import jax
import jax.numpy as jnp
from jax.experimental import pallas as pl
from jax.experimental.pallas import tpu as pltpu

_LOG2E = math.log2(math.e)


def _layer_norm(x, gamma, beta, eps):
    mu = jnp.mean(x, axis=-1, keepdims=True)
    xc = x - mu
    var = jnp.mean(xc * xc, axis=-1, keepdims=True)
    return xc * jax.lax.rsqrt(var + eps) * gamma + beta


def _mha_kernel(q_ref, k_ref, v_ref, gamma_ref, beta_ref, fcw_ref, fcb_ref,
                out_ref, attn_ref, kn_s, vn_s, *,
                scale2, eps, lk_valid, lk_pad, tq, cache_kv):
    qi = pl.program_id(1)
    gamma = gamma_ref[...]            # (1, D) f32
    beta = beta_ref[...]              # (1, D) f32

    # LayerNorm(K) / LayerNorm(V) are shared by every Lq tile of a batch element.
    # Cache the bf16 MXU operands in scratch: once per batch element when the qi
    # axis is sequential ("arbitrary"), or recomputed per step when qi is the
    # megacore-parallel axis (B == 1 path), where a cross-qi cache would be invalid.
    def _ln_kv():
        kn_s[...] = _layer_norm(k_ref[0], gamma, beta, eps).astype(jnp.bfloat16)
        vn_s[...] = _layer_norm(v_ref[0], gamma, beta, eps).astype(jnp.bfloat16)

    if cache_kv:
        @pl.when(qi == 0)
        def _():
            _ln_kv()
    else:
        _ln_kv()

    # LayerNorm the current q tile; fold (1/sqrt(d_k)) * log2(e) into the (TQ, D)
    # tile so the softmax can use exp2 with no per-(TQ, Lk) multiply.
    qn = (_layer_norm(q_ref[0], gamma, beta, eps) * scale2).astype(jnp.bfloat16)

    # scores[t, s] = sum_d qn[t, d] * kn[s, d]; contract dim 1 of both operands
    # (MXU-native transposed-RHS form, no explicit transpose / XLU copy).
    scores = jax.lax.dot_general(
        qn, kn_s[...],
        dimension_numbers=(((1,), (1,)), ((), ())),
        preferred_element_type=jnp.float32)                  # (TQ, Lk_pad) f32

    # TODO(synk): optional user attention mask (masked_fill(mask==0, -1e9)) not wired;
    #             only the mask=None path of the reference forward is implemented.
    if lk_pad != lk_valid:
        # Sequence was padded to a lane/sublane-friendly length: mask padded keys.
        col = jax.lax.broadcasted_iota(jnp.int32, scores.shape, 1)
        scores = jnp.where(col < lk_valid, scores, -1e30)

    scores = scores - jnp.max(scores, axis=-1, keepdims=True)
    e = jnp.exp2(scores)                                     # == exp(orig) via log2e fold
    # Exact normalization: attn is a user-visible output, its rows must sum to 1.
    attn = e * (1.0 / jnp.sum(e, axis=-1, keepdims=True))
    attn_ref[0, 0] = attn.astype(attn_ref.dtype)

    ctx = jnp.dot(attn.astype(jnp.bfloat16), vn_s[...],
                  preferred_element_type=jnp.float32)        # (TQ, D) f32

    # Output projection fc (weight pre-transposed + pre-cast to bf16), then residual.
    fc_out = jnp.dot(ctx.astype(jnp.bfloat16), fcw_ref[...],
                     preferred_element_type=jnp.float32) + fcb_ref[...]

    # Residual = original (not LayerNorm'd) v rows, sliced from the resident full
    # V block — no separate duplicate-v input / DMA stream.
    start = pl.multiple_of(qi * tq, tq)
    residual = v_ref[0, pl.ds(start, tq), :]
    out_ref[0] = (fc_out + residual).astype(out_ref.dtype)


def _round_up(x, m):
    return ((x + m - 1) // m) * m


def _pick_tile(lseq):
    """Pick a (8,128)-friendly q tile and the padded sequence length."""
    if lseq < 128:
        tq = _round_up(max(lseq, 1), 8)
        return tq, tq
    # Prefer 256 (fills the 2x256x256 MXU on v6e/v7x); pick the candidate with the
    # least padding, ties to the larger tile.
    cands = [(_round_up(lseq, t), -t, t) for t in (256, 128)]
    lp, _, t = min(cands)
    return t, lp


def _vmem_limit_bytes():
    # ~85% of physical VMEM per generation (v5e/v6e: 128 MiB -> ~108 MiB,
    # v7x: 64 MiB -> ~54 MiB). Leaves headroom for Mosaic internal scratch,
    # semaphores and the (TQ, Lk) softmax temporaries.
    try:
        cap = getattr(pltpu.get_tpu_info(), "vmem_capacity_bytes", None)
        if cap:
            return int(cap * 0.85)
    except Exception:
        pass
    return 48 * 1024 * 1024  # conservative fallback, safe even on v7x's 64 MiB


def multi_head_attention(q, k, v, gamma, beta, fc_w, fc_b, *, d_k,
                         attn_dtype=jnp.float32):
    """q,k,v: (B, L, D) float32. fc_w: (D_out, D_in) PyTorch layout.

    Returns (out, attn) matching MultiHeadAttention.forward (eval mode, mask=None).
    Pass attn_dtype=jnp.bfloat16 to halve the attn writeback traffic (helps v5e most).
    """
    B, Lq, D = q.shape
    Lk = k.shape[1]
    # Module semantics require len_q == len_k == len_v (attn @ v and out += residual).
    assert k.shape == (B, Lk, D) and v.shape == (B, Lk, D) and Lk == Lq

    tq, lp = _pick_tile(Lq)
    nq = lp // tq
    pad = lp - Lq
    if pad:
        cfg = ((0, 0), (0, pad), (0, 0))
        q = jnp.pad(q, cfg)
        k = jnp.pad(k, cfg)
        v = jnp.pad(v, cfg)

    # Cache LN(K)/LN(V) across q tiles only when there is more than one tile AND more
    # than one batch element; otherwise make both grid axes megacore-parallel so a
    # single-batch call still uses both v7x TensorCores.
    cache_kv = (nq > 1) and (B > 1)
    dims = ("parallel", "arbitrary") if cache_kv else ("parallel", "parallel")

    gamma2 = gamma.reshape(1, D).astype(jnp.float32)
    beta2 = beta.reshape(1, D).astype(jnp.float32)
    fcb2 = fc_b.reshape(1, D).astype(jnp.float32)
    fc_wt = fc_w.T.astype(jnp.bfloat16)     # (D_in, D_out) bf16 MXU operand

    scale2 = (1.0 / (float(d_k) ** 0.5)) * _LOG2E

    kern = functools.partial(
        _mha_kernel, scale2=scale2, eps=1e-6,
        lk_valid=Lk, lk_pad=lp, tq=tq, cache_kv=cache_kv)

    single = pl.Buffered(1)   # constant / per-batch blocks: no double buffering

    out_shapes = (
        jax.ShapeDtypeStruct((B, lp, D), q.dtype),
        jax.ShapeDtypeStruct((B, 1, lp, lp), attn_dtype),  # attn keeps the size-1 head dim
    )

    out_p, attn_p = pl.pallas_call(
        kern,
        out_shape=out_shapes,
        grid_spec=pltpu.PrefetchScalarGridSpec(
            num_scalar_prefetch=0,
            grid=(B, nq),
            in_specs=[
                # q tile: changes every step -> keep default double buffering.
                pl.BlockSpec((1, tq, D), lambda b, i: (b, i, 0)),
                # K (full): only re-read when b changes -> single buffer.
                pl.BlockSpec((1, lp, D), lambda b, i: (b, 0, 0),
                             pipeline_mode=single),
                # V (full): attention values + residual rows -> single buffer.
                pl.BlockSpec((1, lp, D), lambda b, i: (b, 0, 0),
                             pipeline_mode=single),
                # Constant operands: single buffer (index_map never changes).
                pl.BlockSpec((1, D), lambda b, i: (0, 0), pipeline_mode=single),  # gamma
                pl.BlockSpec((1, D), lambda b, i: (0, 0), pipeline_mode=single),  # beta
                pl.BlockSpec((D, D), lambda b, i: (0, 0), pipeline_mode=single),  # fc weight (T, bf16)
                pl.BlockSpec((1, D), lambda b, i: (0, 0), pipeline_mode=single),  # fc bias
            ],
            out_specs=[
                pl.BlockSpec((1, tq, D), lambda b, i: (b, i, 0)),
                pl.BlockSpec((1, 1, tq, lp), lambda b, i: (b, 0, i, 0)),
            ],
            scratch_shapes=[
                pltpu.VMEM((lp, D), jnp.bfloat16),   # cached LayerNorm(K)
                pltpu.VMEM((lp, D), jnp.bfloat16),   # cached LayerNorm(V)
            ],
        ),
        compiler_params=pltpu.CompilerParams(
            dimension_semantics=dims,
            vmem_limit_bytes=_vmem_limit_bytes(),
        ),
    )(q, k, v, gamma2, beta2, fc_wt, fcb2)

    if pad:
        return out_p[:, :Lq, :], attn_p[:, :, :Lq, :Lk]
    return out_p, attn_p


def _reference(q, k, v, gamma, beta, fc_w, fc_b, d_k):
    def ln(x):
        mu = x.mean(-1, keepdims=True)
        var = jnp.square(x - mu).mean(-1, keepdims=True)
        return (x - mu) / jnp.sqrt(var + 1e-6) * gamma + beta

    qn, kn, vn = ln(q), ln(k), ln(v)
    scores = jnp.einsum("bqd,bkd->bqk", qn, kn) / (float(d_k) ** 0.5)
    attn = jax.nn.softmax(scores, axis=-1)
    ctx = jnp.einsum("bqk,bkd->bqd", attn, vn)
    out = ctx @ fc_w.T + fc_b
    out = out + v
    return out, attn[:, None, :, :]


if __name__ == "__main__":
    key = jax.random.PRNGKey(0)
    B, L = 2, 8
    n_head, d_k, d_v = 4, 8, 8
    d_model = n_head * d_v  # 32; forward requires d_model == n_head * d_v for fc to fit

    kq, kk, kv, kw, kb = jax.random.split(key, 5)
    q = jax.random.normal(kq, (B, L, d_model), jnp.float32)
    k = jax.random.normal(kk, (B, L, d_model), jnp.float32)
    v = jax.random.normal(kv, (B, L, d_model), jnp.float32)

    # fc: Linear(n_head*d_v, d_model), xavier_uniform_ weight; LayerNorm defaults.
    bound_w = math.sqrt(6.0 / (d_model + n_head * d_v))
    fc_w = jax.random.uniform(kw, (d_model, n_head * d_v), jnp.float32, -bound_w, bound_w)
    bound_b = 1.0 / math.sqrt(n_head * d_v)
    fc_b = jax.random.uniform(kb, (d_model,), jnp.float32, -bound_b, bound_b)
    gamma = jnp.ones((d_model,), jnp.float32)
    beta = jnp.zeros((d_model,), jnp.float32)
    # Note: w_qs / w_ks / w_vs exist in __init__ but are never used in forward, so
    # they are intentionally not materialized here.

    out, attn = multi_head_attention(q, k, v, gamma, beta, fc_w, fc_b, d_k=d_k)
    jax.block_until_ready((out, attn))

    ref_out, ref_attn = _reference(q, k, v, gamma, beta, fc_w, fc_b, d_k)
    # Tolerances account for bf16 matmul operands (f32 accumulation).
    assert jnp.allclose(out, ref_out, atol=4e-2, rtol=4e-2)
    assert jnp.allclose(attn, ref_attn, atol=2e-2, rtol=2e-2)

    print("KERNEL_OK")
</pallas_src>

<mosaic_0001>
module attributes {stable_mosaic.version = 11 : i64} {
  func.func @_mha_kernel(%arg0: i32, %arg1: i32, %arg2: memref<1x8x32xf32, #tpu.memory_space<vmem>>, %arg3: memref<1x8x32xf32, #tpu.memory_space<vmem>>, %arg4: memref<1x8x32xf32, #tpu.memory_space<vmem>>, %arg5: memref<1x32xf32, #tpu.memory_space<vmem>>, %arg6: memref<1x32xf32, #tpu.memory_space<vmem>>, %arg7: memref<32x32xbf16, #tpu.memory_space<vmem>>, %arg8: memref<1x32xf32, #tpu.memory_space<vmem>>, %arg9: memref<1x8x32xf32, #tpu.memory_space<vmem>>, %arg10: memref<1x1x8x8xf32, #tpu.memory_space<vmem>>, %arg11: memref<8x32xbf16, #tpu.memory_space<vmem>>, %arg12: memref<8x32xbf16, #tpu.memory_space<vmem>>) attributes {dimension_semantics = [#tpu.dimension_semantics<parallel>, #tpu.dimension_semantics<parallel>], iteration_bounds = array<i64: 2, 1>, scalar_prefetch = 0 : i64, scratch_operands = 2 : i64, tpu.core_type = #tpu.core_type<tc>, window_params = [{transform_indices = @transform_0, window_bounds = array<i64: 1, 8, 32>}, {pipeline_mode = #tpu.pipeline_mode<synchronous>, transform_indices = @transform_1, window_bounds = array<i64: 1, 8, 32>}, {pipeline_mode = #tpu.pipeline_mode<synchronous>, transform_indices = @transform_2, window_bounds = array<i64: 1, 8, 32>}, {pipeline_mode = #tpu.pipeline_mode<synchronous>, transform_indices = @transform_3, window_bounds = array<i64: 1, 32>}, {pipeline_mode = #tpu.pipeline_mode<synchronous>, transform_indices = @transform_4, window_bounds = array<i64: 1, 32>}, {pipeline_mode = #tpu.pipeline_mode<synchronous>, transform_indices = @transform_5, window_bounds = array<i64: 32, 32>}, {pipeline_mode = #tpu.pipeline_mode<synchronous>, transform_indices = @transform_6, window_bounds = array<i64: 1, 32>}, {transform_indices = @transform_7, window_bounds = array<i64: 1, 8, 32>}, {transform_indices = @transform_8, window_bounds = array<i64: 1, 1, 8, 8>}]} {
    %c0 = arith.constant 0 : index
    %c0_0 = arith.constant 0 : index
    %0 = vector.load %arg5[%c0, %c0_0] : memref<1x32xf32, #tpu.memory_space<vmem>>, vector<1x32xf32>
    %c0_1 = arith.constant 0 : index
    %c0_2 = arith.constant 0 : index
    %1 = vector.load %arg6[%c0_1, %c0_2] : memref<1x32xf32, #tpu.memory_space<vmem>>, vector<1x32xf32>
    %c0_3 = arith.constant 0 : index
    %c0_4 = arith.constant 0 : index
    %c0_5 = arith.constant 0 : index
    %2 = vector.load %arg3[%c0_3, %c0_4, %c0_5] : memref<1x8x32xf32, #tpu.memory_space<vmem>>, vector<1x8x32xf32>
    %3 = vector.shape_cast %2 : vector<1x8x32xf32> to vector<8x32xf32>
    %cst = arith.constant dense<0.000000e+00> : vector<8xf32>
    %4 = vector.multi_reduction <add>, %3, %cst [1] : vector<8x32xf32> to vector<8xf32>
    %5 = vector.shape_cast %4 : vector<8xf32> to vector<8x1xf32>
    %cst_6 = arith.constant 3.200000e+01 : f32
    %6 = vector.broadcast %cst_6 : f32 to vector<8x1xf32>
    %7 = arith.divf %5, %6 : vector<8x1xf32>
    %8 = vector.broadcast %7 : vector<8x1xf32> to vector<8x32xf32>
    %9 = arith.subf %3, %8 : vector<8x32xf32>
    %10 = arith.mulf %9, %9 : vector<8x32xf32>
    %cst_7 = arith.constant dense<0.000000e+00> : vector<8xf32>
    %11 = vector.multi_reduction <add>, %10, %cst_7 [1] : vector<8x32xf32> to vector<8xf32>
    %12 = vector.shape_cast %11 : vector<8xf32> to vector<8x1xf32>
    %cst_8 = arith.constant 3.200000e+01 : f32
    %13 = vector.broadcast %cst_8 : f32 to vector<8x1xf32>
    %14 = arith.divf %12, %13 : vector<8x1xf32>
    %cst_9 = arith.constant 9.99999997E-7 : f32
    %15 = vector.broadcast %cst_9 : f32 to vector<8x1xf32>
    %16 = arith.addf %14, %15 : vector<8x1xf32>
    %17 = math.rsqrt %16 : vector<8x1xf32>
    %18 = vector.broadcast %17 : vector<8x1xf32> to vector<8x32xf32>
    %19 = arith.mulf %9, %18 : vector<8x32xf32>
    %20 = vector.broadcast %0 : vector<1x32xf32> to vector<8x32xf32>
    %21 = arith.mulf %19, %20 : vector<8x32xf32>
    %22 = vector.broadcast %1 : vector<1x32xf32> to vector<8x32xf32>
    %23 = arith.addf %21, %22 : vector<8x32xf32>
    %24 = arith.truncf %23 : vector<8x32xf32> to vector<8x32xbf16>
    %c0_10 = arith.constant 0 : index
    %c0_11 = arith.constant 0 : index
    %25 = vector.load %arg11[%c0_10, %c0_11] : memref<8x32xbf16, #tpu.memory_space<vmem>>, vector<8x32xbf16>
    tpu.vector_store %arg11[%c0_10, %c0_11], %24 {strides = array<i32>} : memref<8x32xbf16, #tpu.memory_space<vmem>>, vector<8x32xbf16>,
    %c0_12 = arith.constant 0 : index
    %c0_13 = arith.constant 0 : index
    %c0_14 = arith.constant 0 : index
    %26 = vector.load %arg4[%c0_12, %c0_13, %c0_14] : memref<1x8x32xf32, #tpu.memory_space<vmem>>, vector<1x8x32xf32>
    %27 = vector.shape_cast %26 : vector<1x8x32xf32> to vector<8x32xf32>
    %cst_15 = arith.constant dense<0.000000e+00> : vector<8xf32>
    %28 = vector.multi_reduction <add>, %27, %cst_15 [1] : vector<8x32xf32> to vector<8xf32>
    %29 = vector.shape_cast %28 : vector<8xf32> to vector<8x1xf32>
    %cst_16 = arith.constant 3.200000e+01 : f32
    %30 = vector.broadcast %cst_16 : f32 to vector<8x1xf32>
    %31 = arith.divf %29, %30 : vector<8x1xf32>
    %32 = vector.broadcast %31 : vector<8x1xf32> to vector<8x32xf32>
    %33 = arith.subf %27, %32 : vector<8x32xf32>
    %34 = arith.mulf %33, %33 : vector<8x32xf32>
    %cst_17 = arith.constant dense<0.000000e+00> : vector<8xf32>
    %35 = vector.multi_reduction <add>, %34, %cst_17 [1] : vector<8x32xf32> to vector<8xf32>
    %36 = vector.shape_cast %35 : vector<8xf32> to vector<8x1xf32>
    %cst_18 = arith.constant 3.200000e+01 : f32
    %37 = vector.broadcast %cst_18 : f32 to vector<8x1xf32>
    %38 = arith.divf %36, %37 : vector<8x1xf32>
    %cst_19 = arith.constant 9.99999997E-7 : f32
    %39 = vector.broadcast %cst_19 : f32 to vector<8x1xf32>
    %40 = arith.addf %38, %39 : vector<8x1xf32>
    %41 = math.rsqrt %40 : vector<8x1xf32>
    %42 = vector.broadcast %41 : vector<8x1xf32> to vector<8x32xf32>
    %43 = arith.mulf %33, %42 : vector<8x32xf32>
    %44 = vector.broadcast %0 : vector<1x32xf32> to vector<8x32xf32>
    %45 = arith.mulf %43, %44 : vector<8x32xf32>
    %46 = vector.broadcast %1 : vector<1x32xf32> to vector<8x32xf32>
    %47 = arith.addf %45, %46 : vector<8x32xf32>
    %48 = arith.truncf %47 : vector<8x32xf32> to vector<8x32xbf16>
    %c0_20 = arith.constant 0 : index
    %c0_21 = arith.constant 0 : index
    %49 = vector.load %arg12[%c0_20, %c0_21] : memref<8x32xbf16, #tpu.memory_space<vmem>>, vector<8x32xbf16>
    tpu.vector_store %arg12[%c0_20, %c0_21], %48 {strides = array<i32>} : memref<8x32xbf16, #tpu.memory_space<vmem>>, vector<8x32xbf16>,
    %c0_22 = arith.constant 0 : index
    %c0_23 = arith.constant 0 : index
    %c0_24 = arith.constant 0 : index
    %50 = vector.load %arg2[%c0_22, %c0_23, %c0_24] : memref<1x8x32xf32, #tpu.memory_space<vmem>>, vector<1x8x32xf32>
    %51 = vector.shape_cast %50 : vector<1x8x32xf32> to vector<8x32xf32>
    %cst_25 = arith.constant dense<0.000000e+00> : vector<8xf32>
    %52 = vector.multi_reduction <add>, %51, %cst_25 [1] : vector<8x32xf32> to vector<8xf32>
    %53 = vector.shape_cast %52 : vector<8xf32> to vector<8x1xf32>
    %cst_26 = arith.constant 3.200000e+01 : f32
    %54 = vector.broadcast %cst_26 : f32 to vector<8x1xf32>
    %55 = arith.divf %53, %54 : vector<8x1xf32>
    %56 = vector.broadcast %55 : vector<8x1xf32> to vector<8x32xf32>
    %57 = arith.subf %51, %56 : vector<8x32xf32>
    %58 = arith.mulf %57, %57 : vector<8x32xf32>
    %cst_27 = arith.constant dense<0.000000e+00> : vector<8xf32>
    %59 = vector.multi_reduction <add>, %58, %cst_27 [1] : vector<8x32xf32> to vector<8xf32>
    %60 = vector.shape_cast %59 : vector<8xf32> to vector<8x1xf32>
    %cst_28 = arith.constant 3.200000e+01 : f32
    %61 = vector.broadcast %cst_28 : f32 to vector<8x1xf32>
    %62 = arith.divf %60, %61 : vector<8x1xf32>
    %cst_29 = arith.constant 9.99999997E-7 : f32
    %63 = vector.broadcast %cst_29 : f32 to vector<8x1xf32>
    %64 = arith.addf %62, %63 : vector<8x1xf32>
    %65 = math.rsqrt %64 : vector<8x1xf32>
    %66 = vector.broadcast %65 : vector<8x1xf32> to vector<8x32xf32>
    %67 = arith.mulf %57, %66 : vector<8x32xf32>
    %68 = vector.broadcast %0 : vector<1x32xf32> to vector<8x32xf32>
    %69 = arith.mulf %67, %68 : vector<8x32xf32>
    %70 = vector.broadcast %1 : vector<1x32xf32> to vector<8x32xf32>
    %71 = arith.addf %69, %70 : vector<8x32xf32>
    %cst_30 = arith.constant 0.510069728 : f32
    %72 = vector.broadcast %cst_30 : f32 to vector<8x32xf32>
    %73 = arith.mulf %71, %72 : vector<8x32xf32>
    %74 = arith.truncf %73 : vector<8x32xf32> to vector<8x32xbf16>
    %c0_31 = arith.constant 0 : index
    %c0_32 = arith.constant 0 : index
    %75 = vector.load %arg11[%c0_31, %c0_32] : memref<8x32xbf16, #tpu.memory_space<vmem>>, vector<8x32xbf16>
    %cst_33 = arith.constant dense<0.000000e+00> : vector<8x8xf32>
    %76 = tpu.matmul %74, %75, %cst_33 {dimension_numbers = #tpu.dot_dimension_numbers<[1], [1], [0], [0], [0, 0, 1, 0], [], []>} : vector<8x32xbf16>, vector<8x32xbf16>, vector<8x8xf32> -> vector<8x8xf32>
    %cst_34 = arith.constant dense<0xFF800000> : vector<8xf32>
    %77 = vector.multi_reduction <maximumf>, %76, %cst_34 [1] : vector<8x8xf32> to vector<8xf32>
    %78 = vector.shape_cast %77 : vector<8xf32> to vector<8x1xf32>
    %79 = vector.broadcast %78 : vector<8x1xf32> to vector<8x8xf32>
    %80 = arith.subf %76, %79 : vector<8x8xf32>
    %81 = math.exp2 %80 : vector<8x8xf32>
    %cst_35 = arith.constant dense<0.000000e+00> : vector<8xf32>
    %82 = vector.multi_reduction <add>, %81, %cst_35 [1] : vector<8x8xf32> to vector<8xf32>
    %83 = vector.shape_cast %82 : vector<8xf32> to vector<8x1xf32>
    %cst_36 = arith.constant 1.000000e+00 : f32
    %84 = vector.broadcast %cst_36 : f32 to vector<8x1xf32>
    %85 = arith.divf %84, %83 : vector<8x1xf32>
    %86 = vector.broadcast %85 : vector<8x1xf32> to vector<8x8xf32>
    %87 = arith.mulf %81, %86 : vector<8x8xf32>
    %c0_37 = arith.constant 0 : index
    %c0_38 = arith.constant 0 : index
    %c0_39 = arith.constant 0 : index
    %c0_40 = arith.constant 0 : index
    %88 = vector.load %arg10[%c0_37, %c0_38, %c0_39, %c0_40] : memref<1x1x8x8xf32, #tpu.memory_space<vmem>>, vector<1x1x8x8xf32>
    %89 = vector.shape_cast %88 : vector<1x1x8x8xf32> to vector<8x8xf32>
    %90 = vector.shape_cast %87 : vector<8x8xf32> to vector<1x1x8x8xf32>
    tpu.vector_store %arg10[%c0_37, %c0_38, %c0_39, %c0_40], %90 {strides = array<i32>} : memref<1x1x8x8xf32, #tpu.memory_space<vmem>>, vector<1x1x8x8xf32>,
    %91 = arith.truncf %87 : vector<8x8xf32> to vector<8x8xbf16>
    %c0_41 = arith.constant 0 : index
    %c0_42 = arith.constant 0 : index
    %92 = vector.load %arg12[%c0_41, %c0_42] : memref<8x32xbf16, #tpu.memory_space<vmem>>, vector<8x32xbf16>
    %cst_43 = arith.constant dense<0.000000e+00> : vector<8x32xf32>
    %93 = tpu.matmul %91, %92, %cst_43 {dimension_numbers = #tpu.dot_dimension_numbers<[1], [0], [0], [1], [0, 0, 1, 1], [], []>} : vector<8x8xbf16>, vector<8x32xbf16>, vector<8x32xf32> -> vector<8x32xf32>
    %94 = arith.truncf %93 : vector<8x32xf32> to vector<8x32xbf16>
    %c0_44 = arith.constant 0 : index
    %c0_45 = arith.constant 0 : index
    %95 = vector.load %arg7[%c0_44, %c0_45] : memref<32x32xbf16, #tpu.memory_space<vmem>>, vector<32x32xbf16>
    %cst_46 = arith.constant dense<0.000000e+00> : vector<8x32xf32>
    %96 = tpu.matmul %94, %95, %cst_46 {dimension_numbers = #tpu.dot_dimension_numbers<[1], [0], [0], [1], [0, 0, 1, 1], [], []>} : vector<8x32xbf16>, vector<32x32xbf16>, vector<8x32xf32> -> vector<8x32xf32>
    %c0_47 = arith.constant 0 : index
    %c0_48 = arith.constant 0 : index
    %97 = vector.load %arg8[%c0_47, %c0_48] : memref<1x32xf32, #tpu.memory_space<vmem>>, vector<1x32xf32>
    %98 = vector.broadcast %97 : vector<1x32xf32> to vector<8x32xf32>
    %99 = arith.addf %96, %98 : vector<8x32xf32>
    %c8_i32 = arith.constant 8 : i32
    %100 = arith.muli %arg1, %c8_i32 : i32
    %101 = tpu.assume_multiple %100, 8 : i32
    %c0_49 = arith.constant 0 : index
    %102 = arith.index_cast %101 : i32 to index
    %c0_50 = arith.constant 0 : index
    %103 = vector.load %arg4[%c0_49, %102, %c0_50] : memref<1x8x32xf32, #tpu.memory_space<vmem>>, vector<1x8x32xf32>
    %104 = vector.shape_cast %103 : vector<1x8x32xf32> to vector<8x32xf32>
    %105 = arith.addf %99, %104 : vector<8x32xf32>
    %c0_51 = arith.constant 0 : index
    %c0_52 = arith.constant 0 : index
    %c0_53 = arith.constant 0 : index
    %106 = vector.load %arg9[%c0_51, %c0_52, %c0_53] : memref<1x8x32xf32, #tpu.memory_space<vmem>>, vector<1x8x32xf32>
    %107 = vector.shape_cast %106 : vector<1x8x32xf32> to vector<8x32xf32>
    %108 = vector.shape_cast %105 : vector<8x32xf32> to vector<1x8x32xf32>
    tpu.vector_store %arg9[%c0_51, %c0_52, %c0_53], %108 {strides = array<i32>} : memref<1x8x32xf32, #tpu.memory_space<vmem>>, vector<1x8x32xf32>,
    return
  }
  func.func @transform_0(%arg0: i32, %arg1: i32) -> (i32, i32, i32) {
    %c0_i32 = arith.constant 0 : i32
    %c0_i32_0 = arith.constant 0 : i32
    return %arg0, %arg1, %c0_i32 : i32, i32, i32
  }
  func.func @transform_1(%arg0: i32, %arg1: i32) -> (i32, i32, i32) {
    %c0_i32 = arith.constant 0 : i32
    %c0_i32_0 = arith.constant 0 : i32
    %c0_i32_1 = arith.constant 0 : i32
    return %arg0, %c0_i32, %c0_i32_0 : i32, i32, i32
  }
  func.func @transform_2(%arg0: i32, %arg1: i32) -> (i32, i32, i32) {
    %c0_i32 = arith.constant 0 : i32
    %c0_i32_0 = arith.constant 0 : i32
    %c0_i32_1 = arith.constant 0 : i32
    return %arg0, %c0_i32, %c0_i32_0 : i32, i32, i32
  }
  func.func @transform_3(%arg0: i32, %arg1: i32) -> (i32, i32) {
    %c0_i32 = arith.constant 0 : i32
    %c0_i32_0 = arith.constant 0 : i32
    %c0_i32_1 = arith.constant 0 : i32
    return %c0_i32, %c0_i32_0 : i32, i32
  }
  func.func @transform_4(%arg0: i32, %arg1: i32) -> (i32, i32) {
    %c0_i32 = arith.constant 0 : i32
    %c0_i32_0 = arith.constant 0 : i32
    %c0_i32_1 = arith.constant 0 : i32
    return %c0_i32, %c0_i32_0 : i32, i32
  }
  func.func @transform_5(%arg0: i32, %arg1: i32) -> (i32, i32) {
    %c0_i32 = arith.constant 0 : i32
    %c0_i32_0 = arith.constant 0 : i32
    %c0_i32_1 = arith.constant 0 : i32
    return %c0_i32, %c0_i32_0 : i32, i32
  }
  func.func @transform_6(%arg0: i32, %arg1: i32) -> (i32, i32) {
    %c0_i32 = arith.constant 0 : i32
    %c0_i32_0 = arith.constant 0 : i32
    %c0_i32_1 = arith.constant 0 : i32
    return %c0_i32, %c0_i32_0 : i32, i32
  }
  func.func @transform_7(%arg0: i32, %arg1: i32) -> (i32, i32, i32) {
    %c0_i32 = arith.constant 0 : i32
    %c0_i32_0 = arith.constant 0 : i32
    return %arg0, %arg1, %c0_i32 : i32, i32, i32
  }
  func.func @transform_8(%arg0: i32, %arg1: i32) -> (i32, i32, i32, i32) {
    %c0_i32 = arith.constant 0 : i32
    %c0_i32_0 = arith.constant 0 : i32
    %c0_i32_1 = arith.constant 0 : i32
    return %arg0, %c0_i32, %arg1, %c0_i32_0 : i32, i32, i32, i32
  }
}

</mosaic_0001>

<bundles_post_ra>
// kernel: tpu_custom_call.1
= control target key start
LH: loop header
LB: loop body
LE: loop exit
PB: predicated region body
PF: predicated region fallthrough
CT: control target
= control target key end

     0   :  { %s1596_s0 = inlined_call_operand.hbm [shape: f32[2,8,32], index: 0, kind: input, shape index: {}]   ;;  %s1597_s1 = inlined_call_operand.hbm [shape: f32[2,8,32], index: 1, kind: input, shape index: {}]   ;;  %s1598_s2 = inlined_call_operand.hbm [shape: f32[2,8,32], index: 2, kind: input, shape index: {}]   ;;  %s1599_s3 = inlined_call_operand.vmem [shape: f32[1,32], index: 3, kind: input, shape index: {}]   ;;  %s1600_s4 = inlined_call_operand.vmem [shape: f32[1,32], index: 4, kind: input, shape index: {}]   ;;  %s1601_s5 = inlined_call_operand.hbm [shape: bf16[32,32], index: 5, kind: input, shape index: {}]   ;;  %s1602_s6 = inlined_call_operand.vmem [shape: f32[1,32], index: 6, kind: input, shape index: {}]   ;;  %s1603_s7 = inlined_call_operand.hbm [shape: f32[2,8,32], index: 7, kind: output, shape index: {0}]   ;;  %s1604_s8 = inlined_call_operand.hbm [shape: f32[2,1,8,8], index: 8, kind: output, shape index: {1}]  }
   0x1   :  { %1613 = sst [smem:[#allocation21_spill]] %s1597_s1 }
   0x2   :  { %1614 = sst [smem:[#allocation22_spill]] %s1598_s2 }
   0x3   :  { %1615 = sst [smem:[#allocation23_spill]] %s1601_s5 }
   0x4   :  { %14 = vsyncpa [#allocation5], 0 }
   0x5   :  { %16 = vsyncpa [#allocation5 + $0x1], 0 }
   0x6   :  { %17 = vsyncpa [#allocation8], 0 }
   0x7   :  { %18 = vsyncpa [#allocation11], 0 }
   0x8   :  { %19 = vsyncpa [#allocation6], 0 }
   0x9   :  { %21 = vsyncpa [#allocation6 + $0x1], 0 }
   0xa   :  { %22 = vsyncpa [#allocation14], 0 }
   0xb   :  { %24 = vsyncpa [#allocation14 + $0x1], 0  ;;  %s1286_s27 = smov 0   ;;  %s1288_s28 = smov 0  }
   0xc   :  { %s1290_s29 = smov 0   ;;  %s1292_s30 = smov 0  }
   0xd   :  { %s1294_s9 = smov 0   ;;  %s1296_s10 = smov 0  }
   0xe LB: > { %s840_s11 = sadd.s32 4294967295, %s1229_s10   ;;  %s841_s12 = sadd.s32 4294967294, %s1229_s10   ;;  %s1229_s10 = sphi %s1296_s10, %s30_s10   ;;  %s1225_s9 = sphi %s1294_s9, %s1642_s9   ;;  %s1221_s30 = sphi %s1292_s30, %s1641_s30   ;;  %s1217_s29 = sphi %s1290_s29, %s1640_s29   ;;  %s1213_s28 = sphi %s1288_s28, %s1639_s28   ;;  %s1209_s27 = sphi %s1286_s27, %s1638_s27  }
   0xf   : > { %p64_p0 = scmp.ne.s32.totalorder %s1213_s28, %s1209_s27  ;;  %p1318_p1 = scmp.eq.s32.totalorder %s840_s11, 0 }
  0x10   : > { %p1322_p2 = scmp.eq.s32.totalorder %s840_s11, 1  ;;  %p232_p3 = scmp.eq.s32.totalorder %s841_s12, 1 }
  0x11   : > { %s1616_s13 = scalar_select %p1318_p1, 1, 0 }
  0x12   : > { %s1617_s14 = scalar_select %p1322_p2, 1, 0 }
  0x13   : > { %p1328_p4 = por %p1318_p1, %p64_p0  ;;  %p842_p5 = scmp.ge.s32.totalorder %s1229_s10, 1 }
  0x14   : > { %p1333_p6 = por %p232_p3, %p64_p0  ;;  %p267_p7 = scmp.lt.s32.totalorder %s1229_s10, 3 }
  0x15   : > { %s1618_s15 = scalar_select %p1328_p4, 1, 0 }
  0x16   : > { %s1619_s16 = scalar_select %p1333_p6, 1, 0 }
  0x17   : > { %s1338_s17 = sshll.u32 %s1221_s30, 7  ;;  %p1340_p8 = pnand %p842_p5, %p267_p7 }
  0x18   : > { %1620 = sst [smem:[#allocation20_spill]] %s1619_s16  ;;  %s1231_s22 = smov [#allocation7]  }
  0x19   : > { %s1621_s18 = scalar_select %p1340_p8, 1, 0 }
  0x1a   : > { %s1622_s1 = sld [smem:[#allocation21_spill]]  ;;  %s282_s23 = sshll.u32 %s1231_s22, 4  ;;  %s283_s23 = int_to_ptr.vmem [resolvable:$true] %s282_s23 }
  0x1b   : > { %p1606_p9 = pneg %p1340_p8  ;;  %s1623_s2 = sld [smem:[#allocation22_spill]] }
  0x1c   : > { %s1232_s11 = smov [#allocation9]  }
  0x1d   : > { %p1364_p11 = pnand %p1606_p9, %p1328_p4  ;;  %s295_s12 = sshll.u32 %s1232_s11, 4  ;;  %s1368_s12 = int_to_ptr.vmem [resolvable:$true] %s295_s12 }
  0x1f   : > { %p1003_p13 = pneg %p1364_p11 }
  0x20   : > { %s1348_s21 = scalar_lea.hbm %s1622_s1, %s1338_s17  ;;  %s1006_s24 = scalar_lea.hbm %s1622_s1, 256 }
  0x21   : > { %s1357_s26 = scalar_lea.hbm %s1623_s2, %s1338_s17  ;;  %s1001_s19 = scalar_lea.hbm %s1348_s21, 128 }
  0x22   : > { %p1002_p12 = scmp.ne.s32.totalorder %s1348_s21, %s1001_s19  ;;  %p1007_p5 = scmp.lt.s32.totalorder %s1348_s21, %s1622_s1 }
  0x23   : > { %p1008_p7 = scmp.lt.s32.totalorder %s1006_s24, %s1001_s19 }
  0x24   : > { %p1004_p0 = pnand %p1003_p13, %p1002_p12 }
  0x25   : > { %p1009_p10 = por %p1008_p7, %p1007_p5 }
  0x26   : > { %p1005_p3 = pneg %p1004_p0 }
  0x28   : > { %p1010_p9 = pnand %p1009_p10, %p1005_p3 }
  0x2a   : > { %1013 = shalt.err (!%p1010_p9)
}
  0x2b   : > { %s1014_s11 = scalar_lea.vmem %s283_s23, 128  ;;  %p1022_p0 = scmp.lt.s32.totalorder %s283_s23, %s283_s23 }
  0x2c   : > { %p1015_p6 = scmp.ne.s32.totalorder %s283_s23, %s1014_s11  ;;  %p1023_p2 = scmp.lt.s32.totalorder %s1014_s11, %s1014_s11 }
  0x2e   : > { %p1017_p4 = pnand %p1015_p6, %p1003_p13  ;;  %p1024_p8 = por %p1023_p2, %p1022_p0 }
  0x30   : > { %p1018_p12 = pneg %p1017_p4 }
  0x32   : > { %p1025_p1 = pnand %p1024_p8, %p1018_p12 }
  0x34   : > { %1028 = shalt.err (!%p1025_p1)
}
  0x35   : > { %912 = dma.hbm_to_vmem [thread:$0]  (!%p1364_p11), %s1348_s21, 128, %s283_s23, [#allocation8]  }
  0x36   : > { %s1029_s16 = scalar_lea.hbm %s1357_s26, 128  ;;  %s1034_s22 = scalar_lea.hbm %s1623_s2, 256 }
  0x37   : > { %p1030_p9 = scmp.ne.s32.totalorder %s1357_s26, %s1029_s16  ;;  %p1035_p1 = scmp.lt.s32.totalorder %s1357_s26, %s1623_s2 }
  0x38   : > { %p1036_p2 = scmp.lt.s32.totalorder %s1034_s22, %s1029_s16 }
  0x39   : > { %p1032_p10 = pnand %p1030_p9, %p1003_p13 }
  0x3a   : > { %p1037_p4 = por %p1036_p2, %p1035_p1 }
  0x3b   : > { %p1033_p6 = pneg %p1032_p10 }
  0x3d   : > { %p1038_p8 = pnand %p1037_p4, %p1033_p6 }
  0x3f   : > { %1041 = shalt.err (!%p1038_p8)
}
  0x40   : > { %s1042_s21 = scalar_lea.vmem %s1368_s12, 128  ;;  %p1050_p12 = scmp.lt.s32.totalorder %s1368_s12, %s1368_s12 }
  0x41   : > { %p1043_p3 = scmp.ne.s32.totalorder %s1368_s12, %s1042_s21  ;;  %p1051_p0 = scmp.lt.s32.totalorder %s1042_s21, %s1042_s21 }
  0x43   : > { %p1045_p5 = pnand %p1043_p3, %p1003_p13  ;;  %p1052_p9 = por %p1051_p0, %p1050_p12 }
  0x45   : > { %p1046_p7 = pneg %p1045_p5 }
  0x47   : > { %p1053_p10 = pnand %p1052_p9, %p1046_p7 }
  0x49   : > { %1056 = shalt.err (!%p1053_p10)
}
  0x4a   : > { %915 = dma.hbm_to_vmem [thread:$0]  (!%p1364_p11), %s1357_s26, 128, %s1368_s12, [#allocation8]  }
  0x4b   : > { %s1233_s23 = smov [#allocation10]   ;;  %p1625_p6 = scmp.ne.s32.totalorder %s1616_s13, 0 }
  0x4c   : > { %s311_s11 = sshll.u32 %s1233_s23, 4  ;;  %p1626_p1 = scmp.ne.s32.totalorder %s1621_s18, 0  ;;  %s312_s11 = int_to_ptr.vmem [resolvable:$true] %s311_s11 }
  0x4d   : > { %s1068_s19 = scalar_lea.vmem %s312_s11, 256  ;;  %p1076_p7 = scmp.lt.s32.totalorder %s312_s11, %s312_s11 }
  0x4e   : > { %p1627_p2 = pneg %p1626_p1  ;;  %p1069_p8 = scmp.ne.s32.totalorder %s312_s11, %s1068_s19 }
  0x4f   : > { %p1077_p12 = scmp.lt.s32.totalorder %s1068_s19, %s1068_s19 }
  0x50   : > { %p1418_p13 = pnand %p1627_p2, %p1625_p6 }
  0x51   : > { %p1078_p11 = por %p1077_p12, %p1076_p7 }
  0x52   : > { %p1059_p4 = pneg %p1418_p13 }
  0x54   : > { %p1071_p3 = pnand %p1069_p8, %p1059_p4 }
  0x56   : > { %p1072_p5 = pneg %p1071_p3 }
  0x58   : > { %p1079_p0 = pnand %p1078_p11, %p1072_p5 }
  0x5a   : > { %1082 = shalt.err (!%p1079_p0)
}
  0x5b   : > { %s1234_s26 = smov 64   ;;  %s1235_s30 = smov 4  }
  0x5c   : > { %s1629_s5 = sld [smem:[#allocation23_spill]]  ;;  %s42_s22 = sadd.s32 1, %s1225_s9 }
  0x5d   : > { %s51_s24 = sadd.s32 1, %s1217_s29  ;;  %p44_p9 = scmp.ge.s32.totalorder %s42_s22, 2 }
  0x5e   : > { %p58_p10 = scmp.ne.s32.totalorder %s1217_s29, %s1213_s28  ;;  %p59_p6 = scmp.eq.s32.totalorder %s1229_s10, 0 }
  0x5f   : > { %p931_p2 = scmp.lt.s32.totalorder %s1229_s10, 2  ;;  %s1644_s22 = smov (%p44_p9, %s42_s22), 0 }
  0x60   : > { %p60_p4 = por %p59_p6, %p58_p10  ;;  %p1630_p8 = scmp.ne.s32.totalorder %s1617_s14, 0 }
  0x61   : > { %s46_s21 = ssub.s32 %s1225_s9, %s1644_s22  ;;  %s328_s23 = sand.u32 1, %s1217_s29  }
  0x62   : > { %918 = dma.hbm_to_vmem [thread:$0]  (!%p1418_p13), %s1629_s5, 256, %s312_s11, [#allocation11], %s1234_s26, %s1234_s26, %s1235_s30  }
  0x63   : > { %p1439_p3 = por %p1630_p8, %p58_p10  ;;  %p49_p5 = scmp.eq.s32.totalorder %s46_s21, 0 }
  0x64   : > { %s847_s11 = sshll.u32 %s328_s23, 3  ;;  %s848_s16 = sshll.u32 %s1225_s9, 7 }
  0x65   : > { %s1448_s19 = scalar_select %p49_p5, %s1217_s29, %s51_s24  }
  0x66   : > { %s338_s12 = scalar_lea.hbm %s1596_s0, %s848_s16  ;;  %s332_s20 = scalar_lea.vmem [#allocation4], %s847_s11 }
  0x67   : > { %s340_s1 = sshll.u32 %s332_s20, 4  ;;  %p1455_p13 = pnand %p931_p2, %p60_p4  ;;  %s341_s1 = int_to_ptr.vmem [resolvable:$true] %s340_s1 }
  0x68   : > { %s329_s2 = scalar_lea.sflag [#allocation5], %s328_s23  ;;  %s1096_s21 = scalar_lea.vmem %s341_s1, 128 }
  0x69   : > { %p1085_p7 = pneg %p1455_p13  ;;  %p1097_p12 = scmp.ne.s32.totalorder %s341_s1, %s1096_s21 }
  0x6a   : > { %s1236_s24 = smov [#allocation4]  }
  0x6b   : > { %p1099_p11 = pnand %p1097_p12, %p1085_p7  ;;  %s1101_s5 = sshll.u32 %s1236_s24, 4  ;;  %s1102_s5 = int_to_ptr.vmem [resolvable:$false] %s1101_s5 }
  0x6c   : > { %s1103_s16 = scalar_lea.vmem %s1102_s5, 256  ;;  %p1104_p9 = scmp.lt.s32.totalorder %s341_s1, %s1102_s5 }
  0x6d   : > { %p1100_p0 = pneg %p1099_p11  ;;  %p1105_p10 = scmp.lt.s32.totalorder %s1103_s16, %s1096_s21 }
  0x6f   : > { %p1106_p6 = por %p1105_p10, %p1104_p9 }
  0x71   : > { %p1107_p2 = pnand %p1106_p6, %p1100_p0 }
  0x73   : > { %1110 = shalt.err (!%p1107_p2)
}
  0x74   : > { %922 = dma.hbm_to_vmem [thread:$0]  (!%p1455_p13), %s338_s12, 128, %s341_s1, %s329_s2  }
  0x75   : > { %349 = sbr.rel (%p1626_p1) target bundleno = 1366 (0x556), region = 48  ;;  %s1466_s23 = sand.u32 (!%p1626_p1), 1, %s1213_s28  }
  0x76   : > { %s1469_s11 = sshll.u32 (!%p1626_p1), %s1466_s23, 3  ;;  %s352_s5 = scalar_lea.sflag (!%p1626_p1), [#allocation5], %s1466_s23 }
  0x77   : > { %s355_s26 = scalar_lea.vmem (!%p1626_p1), [#allocation4], %s1469_s11  ;;  %p1633_p4 = scmp.ne.s32.totalorder (!%p1626_p1), %s1618_s15, 0 }
  0x7a   : > { %1188 = dma.done.wait (%p1633_p4), %s352_s5, 128  }
  0x7b   : > { %1190 = vsyncadd (%p1633_p4), %s352_s5, 4294967168 }
  0x7c   : > { %1192 = dma.done.wait (%p1633_p4), [#allocation8], 256  }
  0x7d   : > { %1194 = vsyncadd (%p1633_p4), [#allocation8], 4294967040  ;;  %p1634_p1 = scmp.ne.s32.totalorder %s1616_s13, 0 }
  0x7f   : > { %1196 = dma.done.wait (%p1634_p1), [#allocation11], 256  }
  0x80   : > { %1198 = vsyncadd (%p1634_p1), [#allocation11], 4294967040  ;;  %vm409_vm0 = vcmask 261120   ;;  %v408_v0 = vld [vmem:[#allocation7] sm:$0xff]  ;;  %v459_v1 = vld [vmem:[%s355_s26] sm:$0xff]  ;;  %v1237_v14 = vmov 0.0   ;;  %s690_s14 = scalar_lea.hbm %s1604_s8, %s1338_s17 }
  0x81   : > { %v410_v2 = vsel %vm409_vm0, %v408_v0, 0.0  ;;  %v460_v3 = vsel %vm409_vm0, %v459_v1, 0.0  ;;  %875 = vmatprep.subr.bf16.mxu0 %v1237_v14  ;;  %881 = vmatprep.subr.bf16.mxu1 %v1237_v14  ;;  %vm1238_vm1 = vmmov 0   ;;  %v1495_v15 = vld [vmem:[#allocation9] sm:$0xff]  ;;  %vm439_vm2 = vcmask 257024   ;;  %s404_s18 = scalar_lea.vmem [#allocation13], %s1469_s11 }
  0x82   : > { %411 = vadd.xlane.f32.xlu0 %v410_v2  ;;  %877 = vmatprep.mubr.msk.bf16.mxu0 %vm1238_vm1, %v1237_v14  ;;  %v442_v16 = vsel %vm409_vm0, %v1495_v15, 0.0  ;;  %v854_v24 = vld [vmem:[%s1599_s3] ss:$0 sm:$0xff]  ;;  %vm524_vm3 = vcmask 64512   ;;  %vm542_vm4 = vcmask 1043456   ;;  %s692_s30 = sshll.u32 %s404_s18, 4  ;;  %s693_s30 = int_to_ptr.vmem [resolvable:$true] %s692_s30 }
  0x83   : > { %883 = vmatprep.mubr.msk.bf16.mxu1 %vm1238_vm1, %v1237_v14  ;;  %v855_v26 = vld [vmem:[%s1600_s4] ss:$0 sm:$0xff]  ;;  %s664_s21 = scalar_lea.sflag [#allocation14], %s1466_s23  ;;  %s1111_s24 = scalar_lea.vmem %s693_s30, 128 }
  0x84   : > { %p1112_p8 = scmp.ne.s32.totalorder %s693_s30, %s1111_s24  ;;  %s1239_s16 = smov [#allocation13]  }
  0x85   : > { %s1115_s5 = sshll.u32 %s1239_s16, 4  ;;  %s1116_s5 = int_to_ptr.vmem [resolvable:$false] %s1115_s5 }
  0x86   : > { %461 = vadd.xlane.f32.xlu0 %v460_v3  ;;  %v990_v3 = vld [vmem:[#allocation10] sm:$0xff]   ;;  %p1113_p5 = pnand %p1112_p8, %p1439_p3  ;;  %s1117_s26 = scalar_lea.vmem %s1116_s5, 256 }
  0x87   : > { %p1118_p7 = scmp.lt.s32.totalorder %s693_s30, %s1116_s5  ;;  %p1119_p12 = scmp.lt.s32.totalorder %s1117_s26, %s1111_s24 }
  0x88   : > { %p1114_p13 = pneg %p1113_p5 }
  0x89   : > { %p1120_p11 = por %p1119_p12, %p1118_p7 }
  0x8a   : > { %443 = vadd.xlane.f32.xlu0 %v442_v16 }
  0x8b   : > { %p1121_p0 = pnand %p1120_p11, %p1114_p13 }
 0x10b   : > { %v412_v4 = vpop.xlane.xlu0 %411 }
 0x10c   : > { %v414_v5 = vmul.f32 0.03125, %v412_v4 }
 0x10e   : > { %v415_v6 = vsub.f32 %v408_v0, %v414_v5 }
 0x10f   : > { %v462_v7 = vpop.xlane.xlu0 %461 }
 0x110   : > { %v463_v8 = vmul.f32 0.03125, %v462_v7  ;;  %v416_v9 = vmul.f32 %v415_v6, %v415_v6 }
 0x112   : > { %v464_v10 = vsub.f32 %v459_v1, %v463_v8  ;;  %v417_v11 = vsel %vm409_vm0, %v416_v9, 0.0  ;;  %v989_v1 = vld [vmem:[#allocation10 + $0x8] sm:$0xff]  }
 0x113   : > { %418 = vadd.xlane.f32.xlu1 %v417_v11  ;;  %v444_v38 = vpop.xlane.xlu0 %443 }
 0x114   : > { %v465_v12 = vmul.f32 %v464_v10, %v464_v10  ;;  %v445_v39 = vmul.f32 0.03125, %v444_v38 }
 0x116   : > { %v466_v13 = vsel %vm409_vm0, %v465_v12, 0.0  ;;  %v446_v40 = vsub.f32 %v1495_v15, %v445_v39 }
 0x117   : > { %467 = vadd.xlane.f32.xlu1 %v466_v13 }
 0x118   : > { %v447_v41 = vmul.f32 %v446_v40, %v446_v40 }
 0x11a   : > { %v448_v42 = vsel %vm409_vm0, %v447_v41, 0.0 }
 0x11b   : > { %449 = vadd.xlane.f32.xlu0 %v448_v42 }
 0x19c   : > { %v419_v17 = vpop.xlane.xlu1 %418 }
 0x19d   : > { %v420_v18 = vmul.f32 0.03125, %v419_v17 }
 0x19f   : > { %v421_v19 = vadd.f32 1e-06, %v420_v18 }
 0x1a0   : > { %v468_v20 = vpop.xlane.xlu1 %467 }
 0x1a1   : > { %991 = vrsqrt.f32 %v421_v19  ;;  %v469_v21 = vmul.f32 0.03125, %v468_v20 }
 0x1a3   : > { %v470_v22 = vadd.f32 1e-06, %v469_v21 }
 0x1a4   : > { %v450_v43 = vpop.xlane.xlu0 %449 }
 0x1a5   : > { %993 = vrsqrt.f32 %v470_v22  ;;  %v451_v44 = vmul.f32 0.03125, %v450_v43 }
 0x1a7   : > { %v452_v45 = vadd.f32 1e-06, %v451_v44 }
 0x1a9   : > { %995 = vrsqrt.f32 %v452_v45 }
 0x1ae   : > { %v992_v23 = vpop.eup %991 }
 0x1af   : > { %v423_v25 = vmul.f32 %v992_v23, %v415_v6 }
 0x1b1   : > { %v430_v27 = vmul.f32 %v854_v24, %v423_v25 }
 0x1b2   : > { %v994_v28 = vpop.eup %993 }
 0x1b3   : > { %v437_v29 = vadd.f32 %v855_v26, %v430_v27  ;;  %v472_v31 = vmul.f32 %v994_v28, %v464_v10 }
 0x1b5   : > { %v438_v30 = vpack.c.bf16 %v437_v29, %v437_v29  ;;  %v473_v32 = vmul.f32 %v854_v24, %v472_v31 }
 0x1b6   : > { %v996_v46 = vpop.eup %995 }
 0x1b7   : > { %440 = vst.msk [vmem:[#allocation2] sm:$0xf] %vm439_vm2, %v438_v30  ;;  %v474_v33 = vadd.f32 %v855_v26, %v473_v32  ;;  %v454_v47 = vmul.f32 %v996_v46, %v446_v40 }
 0x1b9   : > { %v475_v36 = vmul.f32 0.5100697, %v474_v33  ;;  %v455_v48 = vmul.f32 %v854_v24, %v454_v47 }
 0x1bb   : > { %v476_v37 = vpack.c.bf16 %v475_v36, %v475_v36  ;;  %v456_v49 = vadd.f32 %v855_v26, %v455_v48 }
 0x1bd   : > { %v457_v50 = vpack.c.bf16 %v456_v49, %v456_v49 }
 0x1be   : > { %v477_v34 = vld [vmem:[#allocation2] sm:$0xf] }
 0x1bf   : > { %v482_v35 = vsel %vm409_vm0, %v477_v34, 0  ;;  %458 = vst.msk [vmem:[#allocation3] sm:$0xf] %vm439_vm2, %v457_v50 }
 0x1c0   : > { %876 = vmatpush3.bf16.xpose.msra.mxu0 %v482_v35 }
 0x1c6   : > { %v538_v56 = vld [vmem:[#allocation3] sm:$0xf] }
 0x1c7   : > { %878 = vmatmul.mubr.msk.bf16.vlgmr.msra.gmra.mxu0 %vm409_vm0, %v476_v37  ;;  %v544_v57 = vsel %vm542_vm4, %v538_v56, 0 }
 0x1c8   : > { %882 = vmatpush3.bf16.msra.mxu1 %v544_v57 }
 0x1c9   : > { %887 = vmatprep.subr.bf16.mxu1 %v1237_v14 }
 0x287   : > { %v518_v51 = vpop.f32.mrf.mxu0 }
 0x288   : > { %v525_v52 = vsel %vm524_vm3, %v518_v51, -inf }
 0x289   : > { %526 = vmax.xlane.f32.xlu1 %v525_v52  ;;  %v879_v53 = vpop.f32.mrf.mxu0 }
 0x28b   : > { %v521_v54 = vpop.f32.mrf.mxu0 }
 0x28d   : > { %v880_v55 = vpop.f32.mrf.mxu0 }
 0x312   : > { %v527_v58 = vpop.xlane.xlu1 %526 }
 0x313   : > { %v528_v59 = vsub.f32 %v518_v51, %v527_v58 }
 0x315   : > { %997 = vpow2.f32 %v528_v59 }
 0x322   : > { %v998_v60 = vpop.eup %997 }
 0x323   : > { %v530_v61 = vsel %vm524_vm3, %v998_v60, 0.0 }
 0x324   : > { %531 = vadd.xlane.f32.xlu1 %v530_v61 }
 0x3ad   : > { %v532_v62 = vpop.xlane.xlu1 %531 }
 0x3ae   : > { %999 = vrcp.f32 %v532_v62 }
 0x3bb   : > { %v1000_v63 = vpop.eup %999 }
 0x3bc   : > { %v535_v0 = vmul.f32 %v1000_v63, %v998_v60 }
 0x3be   : > { %v537_v2 = vpack.c.bf16 %v535_v0, %v535_v0  ;;  %536 = vst.msk [vmem:[%s404_s18] sm:$0xff] %vm524_vm3, %v535_v0 }
 0x3c0   : > { %884 = vmatmul.mubr.msk.bf16.vlgmr.msra.gmra.mxu1 %vm524_vm3, %v537_v2 }
 0x3c1   : > { %888 = vmatpush3.bf16.msra.mxu1 %v989_v1  ;;  %891 = vmatprep.mubr.msk.bf16.mxu1 %vm1238_vm1, %v1237_v14 }
 0x3c2   : > { %889 = vmatprep.subr.bf16.mxu1 %v1237_v14 }
 0x3c5   : > { %890 = vmatpush3.bf16.msra.mxu1 %v990_v3 }
 0x480   : > { %v580_v4 = vpop.f32.mrf.mxu1 }
 0x481   : > { %v586_v5 = vpack.c.bf16 %v580_v4, %v580_v4 }
 0x482   : > { %v885_v6 = vpop.f32.mrf.mxu1 }
 0x483   : > { %892 = vmatmul.mubr.msk.bf16.vlgmr.msra.gmra.mxu1 %vm409_vm0, %v586_v5 }
 0x484   : > { %v583_v7 = vpop.f32.mrf.mxu1 }
 0x486   : > { %v886_v8 = vpop.f32.mrf.mxu1 }
 0x487   : > { %1124 = shalt.err (!%p1121_p0)
}
 0x488   : > { %s1125_s1 = scalar_lea.hbm %s690_s14, 128  ;;  %s1129_s15 = scalar_lea.hbm %s1604_s8, 256 }
 0x489   : > { %p1126_p9 = scmp.ne.s32.totalorder %s690_s14, %s1125_s1  ;;  %p1130_p2 = scmp.lt.s32.totalorder %s690_s14, %s1604_s8 }
 0x48a   : > { %p1131_p4 = scmp.lt.s32.totalorder %s1129_s15, %s1125_s1 }
 0x48b   : > { %p1127_p10 = pnand %p1126_p9, %p1439_p3 }
 0x48c   : > { %p1132_p1 = por %p1131_p4, %p1130_p2 }
 0x48d   : > { %p1128_p6 = pneg %p1127_p10 }
 0x48f   : > { %p1133_p8 = pnand %p1132_p1, %p1128_p6 }
 0x491   : > { %1136 = shalt.err (!%p1133_p8)
}
 0x492   : > { %906 = dma.vmem_to_hbm [thread:$0]  (%p1439_p3), %s693_s30, 128, %s690_s14, %s664_s21   ;;  %v858_v9 = vld [vmem:[%s1602_s6] ss:$0 sm:$0xff] }
 0x493   : > { %s397_s16 = scalar_lea.vmem [#allocation12], %s1469_s11  ;;  %s1547_s2 = scalar_lea.hbm %s1603_s7, %s1338_s17 }
 0x494   : > { %s678_s5 = sshll.u32 %s397_s16, 4  ;;  %s659_s11 = scalar_lea.sflag [#allocation6], %s1466_s23  ;;  %s1549_s5 = int_to_ptr.vmem [resolvable:$true] %s678_s5 }
 0x495   : > { %s1137_s30 = scalar_lea.vmem %s1549_s5, 128  ;;  %s1240_s14 = smov [#allocation12]  }
 0x496   : > { %p1138_p5 = scmp.ne.s32.totalorder %s1549_s5, %s1137_s30  ;;  %s1141_s21 = sshll.u32 %s1240_s14, 4  ;;  %s1142_s21 = int_to_ptr.vmem [resolvable:$false] %s1141_s21 }
 0x497   : > { %s1143_s17 = scalar_lea.vmem %s1142_s21, 256  ;;  %p1144_p12 = scmp.lt.s32.totalorder %s1549_s5, %s1142_s21 }
 0x498   : > { %p1139_p13 = pnand %p1138_p5, %p1439_p3  ;;  %p1145_p11 = scmp.lt.s32.totalorder %s1143_s17, %s1137_s30 }
 0x49a   : > { %p1140_p7 = pneg %p1139_p13  ;;  %p1146_p0 = por %p1145_p11, %p1144_p12 }
 0x49c   : > { %p1147_p9 = pnand %p1146_p0, %p1140_p7 }
 0x543   : > { %v647_v10 = vpop.f32.mrf.mxu1 }
 0x544   : > { %v648_v11 = vadd.f32 %v858_v9, %v647_v10 }
 0x545   : > { %v893_v12 = vpop.f32.mrf.mxu1 }
 0x546   : > { %v656_v13 = vadd.f32 %v648_v11, %v1495_v15 }
 0x547   : > { %v650_v14 = vpop.f32.mrf.mxu1 }
 0x548   : > { %657 = vst.msk [vmem:[%s397_s16] sm:$0xff] %vm409_vm0, %v656_v13 }
 0x549   : > { %v894_v16 = vpop.f32.mrf.mxu1 }
 0x54a   : > { %1150 = shalt.err (!%p1147_p9)
}
 0x54b   : > { %s1151_s13 = scalar_lea.hbm %s1547_s2, 128  ;;  %s1155_s18 = scalar_lea.hbm %s1603_s7, 256 }
 0x54c   : > { %p1152_p10 = scmp.ne.s32.totalorder %s1547_s2, %s1151_s13  ;;  %p1156_p4 = scmp.lt.s32.totalorder %s1547_s2, %s1603_s7 }
 0x54d   : > { %p1157_p1 = scmp.lt.s32.totalorder %s1155_s18, %s1151_s13 }
 0x54e   : > { %p1153_p6 = pnand %p1152_p10, %p1439_p3 }
 0x54f   : > { %p1158_p8 = por %p1157_p1, %p1156_p4 }
 0x550   : > { %p1154_p2 = pneg %p1153_p6 }
 0x552   : > { %p1159_p5 = pnand %p1158_p8, %p1154_p2 }
 0x554   : > { %1162 = shalt.err (!%p1159_p5)
}
 0x555   : > { %905 = dma.vmem_to_hbm [thread:$0]  (%p1439_p3), %s1549_s5, 128, %s1547_s2, %s659_s11  }
 0x556 PF: > { %s1635_s24 = sld [smem:[#allocation20_spill]]  ;;  %s704_s16 = sand.u32 1, %s1209_s27  }
 0x557   : > { %p1637_p7 = scmp.ge.s32.totalorder %s1229_s10, 2  ;;  %s705_s26 = scalar_lea.sflag [#allocation6], %s704_s16 }
 0x55c   : > { %p1636_p13 = scmp.ne.s32.totalorder %s1635_s24, 0 }
 0x55e   : > { %p924_p12 = pnand %p1637_p7, %p1636_p13 }
 0x560   : > { %p925_p11 = pneg %p924_p12 }
 0x562   : > { %1200 = dma.done.wait (%p925_p11), %s705_s26, 128  }
 0x563   : > { %1202 = vsyncadd (%p925_p11), %s705_s26, 4294967168  ;;  %s714_s1 = scalar_lea.sflag [#allocation14], %s704_s16 }
 0x564   : > { %1204 = dma.done.wait (%p925_p11), %s714_s1, 128  }
 0x565   : > { %1206 = vsyncadd (%p925_p11), %s714_s1, 4294967168  ;;  %s30_s10 = sadd.s32 1, %s1229_s10   ;;  %s1638_s27 = smov %s1213_s28 }
 0x566   : > { %p27_p0 = scmp.ge.s32.totalorder %s30_s10, 4   ;;  %s1639_s28 = smov %s1217_s29 }
 0x567   : > { %s1640_s29 = smov %s1448_s19  ;;  %s1641_s30 = smov %s1225_s9 }
 0x568   : > { %s1642_s9 = smov %s1644_s22  ;;  %29 = sbr.rel (!%p27_p0) target bundleno = 14 (0xe), region = 125 }
 0x56d   :  { %719 = vsyncpa [#allocation5], 1 }
 0x56e   :  { %721 = vsyncpa [#allocation5 + $0x1], 1 }
 0x56f   :  { %722 = vsyncpa [#allocation8], 1 }
 0x570   :  { %723 = vsyncpa [#allocation11], 1 }
 0x571   :  { %724 = vsyncpa [#allocation6], 1 }
 0x572   :  { %726 = vsyncpa [#allocation6 + $0x1], 1 }
 0x573   :  { %727 = vsyncpa [#allocation14], 1 }
 0x574   :  { %729 = vsyncpa [#allocation14 + $0x1], 1 }

</bundles_post_ra>
